<compile_context>
chip_gen: v5e
topology: v5e:2x2
jax: 0.10.0
libtpu: 0.0.40
codegen_flags: <defaults>
</compile_context>

<pallas_src>
import functools

import jax
import jax.numpy as jnp
from jax.experimental import pallas as pl
from jax.experimental.pallas import tpu as pltpu


def _add_norm_kernel(x_ref, w_ref, b_ref, o_ref, *, eps, features, func):
    """Unpacked path: one logical row per slab row (lanes == features)."""
    x = x_ref[...].astype(jnp.float32)                       # (TR, F)
    y = func(x)                                              # fused func, f32
    mean = jnp.mean(y, axis=-1, keepdims=True)
    diff = y - mean
    # torch.std default is unbiased (ddof = 1); guard features == 1.
    var = jnp.sum(diff * diff, axis=-1, keepdims=True) / max(features - 1, 1)
    inv = pl.reciprocal(jnp.sqrt(var) + eps, approx=False)   # exact: free under the DMA
    normed = diff * inv * w_ref[...] + b_ref[...]
    o_ref[...] = (x + normed).astype(o_ref.dtype)            # fused residual add


def _add_norm_packed_kernel(x_ref, w_ref, b_ref, seg_ref, o_ref, *, eps, features, func):
    """Packed path: k = 128 // F logical rows per 128-lane slab row.

    Per-segment statistics via a (128,128) same-segment 0/1 indicator matmul on
    the MXU; mean/sumsq come back already broadcast per element.
    """
    x = x_ref[...].astype(jnp.float32)                       # (TR, 128)
    y = func(x)                                              # fused func, f32
    seg = seg_ref[...]                                       # (128, 128) f32 indicator
    mean = jnp.dot(y, seg, preferred_element_type=jnp.float32) * (1.0 / features)
    diff = y - mean
    sumsq = jnp.dot(diff * diff, seg, preferred_element_type=jnp.float32)
    std = jnp.sqrt(sumsq / max(features - 1, 1))
    inv = pl.reciprocal(std + eps, approx=False)
    normed = diff * inv * w_ref[...] + b_ref[...]
    o_ref[...] = (x + normed).astype(o_ref.dtype)


def _choose_rows_per_tile(rows, lanes, itemsize, target_bytes):
    """~target_bytes of input per block, multiple of the sublane pack, <= rows."""
    sublane = 8 if itemsize >= 4 else (16 if itemsize == 2 else 32)
    cand = max(sublane, (target_bytes // max(1, lanes * itemsize)) // sublane * sublane)
    # If cand >= rows the single block equals the full dim (always legal);
    # otherwise cand is a sublane multiple and the last block may be partial.
    return int(min(cand, rows))


def add_norm(x, w, b, eps=1e-6, func=None, rows_per_tile=None, target_tile_bytes=2 << 20):
    """AddNorm forward: x + LayerNorm(func(x)) (dropout = identity / eval mode).

    x: (..., F), w/b: (F,). `func` must be a JAX-traceable elementwise function
    (or None for identity); it is fused into the kernel.
    """
    if func is None:
        func = lambda t: t

    orig_shape = x.shape
    F = orig_shape[-1]
    R = 1
    for d in orig_shape[:-1]:
        R *= d

    w32 = jnp.asarray(w, jnp.float32).reshape(-1)
    b32 = jnp.asarray(b, jnp.float32).reshape(-1)

    # Lane-density handling: pack k = 128 // F logical rows per 128-lane slab row
    # when F < 128 (requires F | 128 and k | R); otherwise plain (R, F) slab.
    k = 128 // F if (0 < F < 128 and 128 % F == 0) else 1
    pack = (k > 1) and (R % k == 0)
    if pack:
        lanes = 128
        Rp = R // k
        x2 = x.reshape(Rp, lanes)
        w2 = jnp.tile(w32, k).reshape(1, lanes)
        b2 = jnp.tile(b32, k).reshape(1, lanes)
        seg_id = jnp.arange(lanes, dtype=jnp.int32) // F
        seg = (seg_id[:, None] == seg_id[None, :]).astype(jnp.float32)
    else:
        lanes = F
        Rp = R
        x2 = x.reshape(Rp, lanes)
        w2 = w32.reshape(1, lanes)
        b2 = b32.reshape(1, lanes)

    itemsize = jnp.dtype(x.dtype).itemsize
    if rows_per_tile is None:
        rows_per_tile = _choose_rows_per_tile(Rp, lanes, itemsize, target_tile_bytes)
    num_tiles = pl.cdiv(Rp, rows_per_tile)   # partial final block: no jnp.pad / slice

    # VMEM budget: double-buffered x/out tiles + f32 temporaries + resident params.
    tile_in = rows_per_tile * lanes * itemsize
    tile_f32 = rows_per_tile * lanes * 4
    live = 2 * 2 * tile_in + 8 * tile_f32 + (128 * 128 * 4) + 4 * lanes * 4
    vmem_limit = int(min(max(2 * live, 32 << 20), 48 << 20))  # <= 48 MiB: safe on v7x (64 MiB)

    row_spec = pl.BlockSpec((rows_per_tile, lanes), lambda i: (i, 0))
    param_spec = pl.BlockSpec((1, lanes), lambda i: (0, 0))

    if pack:
        kernel = functools.partial(_add_norm_packed_kernel, eps=eps, features=F, func=func)
        in_specs = [row_spec, param_spec, param_spec,
                    pl.BlockSpec((128, 128), lambda i: (0, 0))]   # seg matrix, resident
        args = (x2, w2, b2, seg)
    else:
        kernel = functools.partial(_add_norm_kernel, eps=eps, features=F, func=func)
        in_specs = [row_spec, param_spec, param_spec]
        args = (x2, w2, b2)

    out = pl.pallas_call(
        kernel,
        out_shape=jax.ShapeDtypeStruct((Rp, lanes), x.dtype),
        grid_spec=pltpu.PrefetchScalarGridSpec(
            num_scalar_prefetch=0,
            grid=(num_tiles,),
            in_specs=in_specs,
            out_specs=row_spec,
        ),
        compiler_params=pltpu.CompilerParams(
            dimension_semantics=("parallel",),   # row tiles shard across v7x's 2 TCs
            vmem_limit_bytes=vmem_limit,
        ),
    )(*args)

    return out.reshape(orig_shape)


if __name__ == "__main__":
    key = jax.random.PRNGKey(0)
    batch, seq, hidden = 2, 8, 32  # msg_embed_size = hidden
    x = jax.random.normal(key, (batch, seq, hidden), dtype=jnp.float32)

    # nn.Parameter(torch.ones(features)) / torch.zeros(features)
    w = jnp.ones((hidden,), dtype=jnp.float32)
    b = jnp.zeros((hidden,), dtype=jnp.float32)
    eps = 1e-6

    # Deterministic elementwise stand-in for `func`; dropout = identity (eval mode).
    func = jnp.tanh

    out = add_norm(x, w, b, eps=eps, func=func)
    out = jax.block_until_ready(out)

    # Plain-JAX reference (unbiased std matching torch.std, eps added to std).
    y = func(x)
    mean = jnp.mean(y, axis=-1, keepdims=True)
    std = jnp.sqrt(jnp.sum((y - mean) ** 2, axis=-1, keepdims=True) / (hidden - 1))
    ref = x + (w * (y - mean) / (std + eps) + b)

    # Exact reciprocal in-kernel -> tight tolerance.
    assert jnp.allclose(out, ref, atol=1e-4, rtol=1e-4), "mismatch vs reference"

    print("KERNEL_OK")
</pallas_src>

<mosaic_0001>
module attributes {stable_mosaic.version = 11 : i64} {
  func.func @_add_norm_packed_kernel(%arg0: i32, %arg1: memref<4x128xf32, #tpu.memory_space<vmem>>, %arg2: memref<1x128xf32, #tpu.memory_space<vmem>>, %arg3: memref<1x128xf32, #tpu.memory_space<vmem>>, %arg4: memref<128x128xf32, #tpu.memory_space<vmem>>, %arg5: memref<4x128xf32, #tpu.memory_space<vmem>>) attributes {dimension_semantics = [#tpu.dimension_semantics<parallel>], iteration_bounds = array<i64: 1>, scalar_prefetch = 0 : i64, scratch_operands = 0 : i64, tpu.core_type = #tpu.core_type<tc>, window_params = [{transform_indices = @transform_0, window_bounds = array<i64: 4, 128>}, {pipeline_mode = #tpu.pipeline_mode<synchronous>, transform_indices = @transform_1, window_bounds = array<i64: 1, 128>}, {pipeline_mode = #tpu.pipeline_mode<synchronous>, transform_indices = @transform_2, window_bounds = array<i64: 1, 128>}, {pipeline_mode = #tpu.pipeline_mode<synchronous>, transform_indices = @transform_3, window_bounds = array<i64: 128, 128>}, {transform_indices = @transform_4, window_bounds = array<i64: 4, 128>}]} {
    %c0 = arith.constant 0 : index
    %c0_0 = arith.constant 0 : index
    %0 = vector.load %arg1[%c0, %c0_0] : memref<4x128xf32, #tpu.memory_space<vmem>>, vector<4x128xf32>
    %1 = math.tanh %0 : vector<4x128xf32>
    %c0_1 = arith.constant 0 : index
    %c0_2 = arith.constant 0 : index
    %2 = vector.load %arg4[%c0_1, %c0_2] : memref<128x128xf32, #tpu.memory_space<vmem>>, vector<128x128xf32>
    %cst = arith.constant dense<0.000000e+00> : vector<4x128xf32>
    %3 = tpu.matmul %1, %2, %cst {dimension_numbers = #tpu.dot_dimension_numbers<[1], [0], [0], [1], [0, 0, 1, 1], [], []>} : vector<4x128xf32>, vector<128x128xf32>, vector<4x128xf32> -> vector<4x128xf32>
    %cst_3 = arith.constant 3.125000e-02 : f32
    %4 = vector.broadcast %cst_3 : f32 to vector<4x128xf32>
    %5 = arith.mulf %3, %4 : vector<4x128xf32>
    %6 = arith.subf %1, %5 : vector<4x128xf32>
    %7 = arith.mulf %6, %6 : vector<4x128xf32>
    %cst_4 = arith.constant dense<0.000000e+00> : vector<4x128xf32>
    %8 = tpu.matmul %7, %2, %cst_4 {dimension_numbers = #tpu.dot_dimension_numbers<[1], [0], [0], [1], [0, 0, 1, 1], [], []>} : vector<4x128xf32>, vector<128x128xf32>, vector<4x128xf32> -> vector<4x128xf32>
    %cst_5 = arith.constant 3.100000e+01 : f32
    %9 = vector.broadcast %cst_5 : f32 to vector<4x128xf32>
    %10 = arith.divf %8, %9 : vector<4x128xf32>
    %11 = math.sqrt %10 : vector<4x128xf32>
    %cst_6 = arith.constant 9.99999997E-7 : f32
    %12 = vector.broadcast %cst_6 : f32 to vector<4x128xf32>
    %13 = arith.addf %11, %12 : vector<4x128xf32>
    %14 = tpu.reciprocal %13 : vector<4x128xf32> -> vector<4x128xf32>
    %15 = arith.mulf %6, %14 : vector<4x128xf32>
    %c0_7 = arith.constant 0 : index
    %c0_8 = arith.constant 0 : index
    %16 = vector.load %arg2[%c0_7, %c0_8] : memref<1x128xf32, #tpu.memory_space<vmem>>, vector<1x128xf32>
    %17 = vector.broadcast %16 : vector<1x128xf32> to vector<4x128xf32>
    %18 = arith.mulf %15, %17 : vector<4x128xf32>
    %c0_9 = arith.constant 0 : index
    %c0_10 = arith.constant 0 : index
    %19 = vector.load %arg3[%c0_9, %c0_10] : memref<1x128xf32, #tpu.memory_space<vmem>>, vector<1x128xf32>
    %20 = vector.broadcast %19 : vector<1x128xf32> to vector<4x128xf32>
    %21 = arith.addf %18, %20 : vector<4x128xf32>
    %22 = arith.addf %0, %21 : vector<4x128xf32>
    %c0_11 = arith.constant 0 : index
    %c0_12 = arith.constant 0 : index
    %23 = vector.load %arg5[%c0_11, %c0_12] : memref<4x128xf32, #tpu.memory_space<vmem>>, vector<4x128xf32>
    tpu.vector_store %arg5[%c0_11, %c0_12], %22 {strides = array<i32>} : memref<4x128xf32, #tpu.memory_space<vmem>>, vector<4x128xf32>,
    return
  }
  func.func @transform_0(%arg0: i32) -> (i32, i32) {
    %c0_i32 = arith.constant 0 : i32
    %c0_i32_0 = arith.constant 0 : i32
    return %arg0, %c0_i32 : i32, i32
  }
  func.func @transform_1(%arg0: i32) -> (i32, i32) {
    %c0_i32 = arith.constant 0 : i32
    %c0_i32_0 = arith.constant 0 : i32
    %c0_i32_1 = arith.constant 0 : i32
    return %c0_i32, %c0_i32_0 : i32, i32
  }
  func.func @transform_2(%arg0: i32) -> (i32, i32) {
    %c0_i32 = arith.constant 0 : i32
    %c0_i32_0 = arith.constant 0 : i32
    %c0_i32_1 = arith.constant 0 : i32
    return %c0_i32, %c0_i32_0 : i32, i32
  }
  func.func @transform_3(%arg0: i32) -> (i32, i32) {
    %c0_i32 = arith.constant 0 : i32
    %c0_i32_0 = arith.constant 0 : i32
    %c0_i32_1 = arith.constant 0 : i32
    return %c0_i32, %c0_i32_0 : i32, i32
  }
  func.func @transform_4(%arg0: i32) -> (i32, i32) {
    %c0_i32 = arith.constant 0 : i32
    %c0_i32_0 = arith.constant 0 : i32
    return %arg0, %c0_i32 : i32, i32
  }
}

</mosaic_0001>

<bundles_post_ra>
// kernel: tpu_custom_call.1
= control target key start
LH: loop header
LB: loop body
LE: loop exit
PB: predicated region body
PF: predicated region fallthrough
CT: control target
= control target key end

     0   :  { %9 = vsyncpa [#allocation3], 0  ;;  %s358_s0 = inlined_call_operand.hbm [shape: f32[4,128], index: 0, kind: input, shape index: {}]   ;;  %s359_s1 = inlined_call_operand.hbm [shape: f32[1,128], index: 1, kind: input, shape index: {}]   ;;  %s360_s2 = inlined_call_operand.vmem [shape: f32[1,128], index: 2, kind: input, shape index: {}]   ;;  %s361_s3 = inlined_call_operand.hbm [shape: f32[128,128], index: 3, kind: input, shape index: {}]   ;;  %s362_s4 = inlined_call_operand.hbm [shape: f32[4,128], index: 4, kind: output, shape index: {}]  }
   0x1   :  { %10 = vsyncpa [#allocation6], 0  ;;  %s28_s17 = sshll.u32 %s359_s1, 4  ;;  %s29_s17 = int_to_ptr.hbm [resolvable:$true] %s28_s17 }
   0x2   :  { %11 = vsyncpa [#allocation4], 0  ;;  %s307_s18 = smov [#allocation5]   ;;  %s17_s22 = sshll.u32 %s358_s0, 4  ;;  %s18_s22 = int_to_ptr.hbm [resolvable:$true] %s17_s22 }
   0x3   :  { %s30_s19 = sshll.u32 %s307_s18, 4  ;;  %s308_s23 = smov [#allocation2]   ;;  %s31_s19 = int_to_ptr.vmem [resolvable:$true] %s30_s19 }
   0x4   :  { %33 = dma.hbm_to_vmem [thread:$0]  %s29_s17, 16, %s31_s19, [#allocation6]  }
   0x5   :  { %s19_s24 = sshll.u32 %s308_s23, 4  ;;  %s40_s27 = sshll.u32 %s361_s3, 4  ;;  %s20_s24 = int_to_ptr.vmem [resolvable:$true] %s19_s24  ;;  %s41_s27 = int_to_ptr.hbm [resolvable:$true] %s40_s27 }
   0x6   :  { %22 = dma.hbm_to_vmem [thread:$0]  %s18_s22, 64, %s20_s24, [#allocation3]  }
   0x7   :  { %s309_s1 = smov [#allocation7]   ;;  %s310_s29 = smov 128  }
   0x8   :  { %s42_s28 = sshll.u32 %s309_s1, 4  ;;  %s311_s30 = smov 8   ;;  %s43_s28 = int_to_ptr.vmem [resolvable:$true] %s42_s28 }
   0x9   :  { %48 = dma.hbm_to_vmem [thread:$0]  %s41_s27, 2048, %s43_s28, [#allocation6], %s310_s29, %s310_s29, %s311_s30  }
   0xa   :  { %301 = dma.done.wait [#allocation3], 64  }
   0xb   :  { %302 = vsyncadd [#allocation3], 4294967232 }
   0xc   :  { %303 = dma.done.wait [#allocation6], 2064  }
   0xd   :  { %304 = vsyncadd [#allocation6], 4294965232  ;;  %v78_v0 = vld [vmem:[#allocation7 + $0x78] sm:$0xff]  ;;  %v77_v1 = vld [vmem:[#allocation7 + $0x70] sm:$0xff]  ;;  %v312_v22 = vmov 31.0   ;;  %s313_s5 = smov [#allocation8]  }
   0xe   :  { %79 = vmatpush.msra.mxu0 %v78_v0  ;;  %102 = vmatpush.msra.mxu1 %v78_v0  ;;  %v76_v2 = vld [vmem:[#allocation7 + $0x68] sm:$0xff]  ;;  %v75_v3 = vld [vmem:[#allocation7 + $0x60] sm:$0xff]  ;;  %v74_v4 = vld [vmem:[#allocation7 + $0x58] sm:$0xff]  ;;  %s175_s6 = sshll.u32 %s313_s5, 4  ;;  %s177_s9 = sshll.u32 %s362_s4, 4  ;;  %s176_s6 = int_to_ptr.vmem [resolvable:$true] %s175_s6  ;;  %s178_s9 = int_to_ptr.hbm [resolvable:$true] %s177_s9 }
   0xf   :  { %v73_v5 = vld [vmem:[#allocation7 + $0x50] sm:$0xff]  ;;  %v72_v6 = vld [vmem:[#allocation7 + $0x48] sm:$0xff]  ;;  %v71_v7 = vld [vmem:[#allocation7 + $0x40] sm:$0xff] }
  0x10   :  { %80 = vmatpush.msra.mxu0 %v77_v1  ;;  %103 = vmatpush.msra.mxu1 %v77_v1  ;;  %v70_v8 = vld [vmem:[#allocation7 + $0x38] sm:$0xff]  ;;  %v69_v9 = vld [vmem:[#allocation7 + $0x30] sm:$0xff]  ;;  %v68_v10 = vld [vmem:[#allocation7 + $0x28] sm:$0xff] }
  0x11   :  { %v67_v11 = vld [vmem:[#allocation7 + $0x20] sm:$0xff]  ;;  %v348_v12 = vld [vmem:[#allocation2] sm:$0xf]  ;;  %v65_v14 = vld [vmem:[#allocation7 + $0x10] sm:$0xff] }
  0x12   :  { %81 = vmatpush.msra.mxu0 %v76_v2  ;;  %104 = vmatpush.msra.mxu1 %v76_v2  ;;  %v66_v13 = vld [vmem:[#allocation7 + $0x18] sm:$0xff]  ;;  %197 = vtanh.f32 %v348_v12  ;;  %v64_v15 = vld [vmem:[#allocation7 + $0x8] sm:$0xff]  ;;  %v63_v16 = vld [vmem:[#allocation7] sm:$0xff] }
  0x13   :  { %199 = vrcp.f32 %v312_v22  ;;  %v195_v51 = vld [vmem:[#allocation5] ss:$0 sm:$0xff]  ;;  %v196_v54 = vld [vmem:[%s360_s2] ss:$0 sm:$0xff] }
  0x14   :  { %82 = vmatpush.msra.mxu0 %v75_v3  ;;  %105 = vmatpush.msra.mxu1 %v75_v3 }
  0x16   :  { %83 = vmatpush.msra.mxu0 %v74_v4  ;;  %106 = vmatpush.msra.mxu1 %v74_v4 }
  0x18   :  { %84 = vmatpush.msra.mxu0 %v73_v5  ;;  %107 = vmatpush.msra.mxu1 %v73_v5  ;;  %v198_v17 = vpop.eup %197 }
  0x19   :  { %v200_v23 = vpop.eup %199 }
  0x1a   :  { %85 = vmatpush.msra.mxu0 %v72_v6  ;;  %108 = vmatpush.msra.mxu1 %v72_v6  ;;  %v123_v24 = vmul.f32 31.0, %v200_v23  ;;  %vm127_vm0 = vweird.f32 %v200_v23 }
  0x1c   :  { %86 = vmatpush.msra.mxu0 %v71_v7  ;;  %109 = vmatpush.msra.mxu1 %v71_v7  ;;  %v124_v25 = vsub.f32 1.0, %v123_v24 }
  0x1e   :  { %87 = vmatpush.msra.mxu0 %v70_v8  ;;  %110 = vmatpush.msra.mxu1 %v70_v8  ;;  %v125_v26 = vmul.f32 %v200_v23, %v124_v25 }
  0x20   :  { %88 = vmatpush.msra.mxu0 %v69_v9  ;;  %111 = vmatpush.msra.mxu1 %v69_v9  ;;  %v126_v27 = vadd.f32 %v200_v23, %v125_v26 }
  0x22   :  { %89 = vmatpush.msra.mxu0 %v68_v10  ;;  %112 = vmatpush.msra.mxu1 %v68_v10  ;;  %v128_v28 = vsel %vm127_vm0, %v200_v23, %v126_v27 }
  0x24   :  { %90 = vmatpush.msra.mxu0 %v67_v11  ;;  %113 = vmatpush.msra.mxu1 %v67_v11 }
  0x26   :  { %91 = vmatpush.msra.mxu0 %v66_v13  ;;  %114 = vmatpush.msra.mxu1 %v66_v13 }
  0x28   :  { %92 = vmatpush.msra.mxu0 %v65_v14  ;;  %115 = vmatpush.msra.mxu1 %v65_v14 }
  0x2a   :  { %93 = vmatpush.msra.mxu0 %v64_v15  ;;  %116 = vmatpush.msra.mxu1 %v64_v15 }
  0x2c   :  { %94 = vmatpush.msra.mxu0 %v63_v16  ;;  %117 = vmatpush.msra.mxu1 %v63_v16 }
  0x2d   :  { %95 = vmatmul.f32.vlgmr.msra.gmra.mxu0 %v198_v17 }
  0xaa   :  { %v96_v18 = vpop.f32.mrf.mxu0 }
  0xab   :  { %v99_v19 = vmul.f32 0.03125, %v96_v18 }
  0xad   :  { %v100_v20 = vsub.f32 %v198_v17, %v99_v19 }
  0xaf   :  { %v101_v21 = vmul.f32 %v100_v20, %v100_v20 }
  0xb1   :  { %118 = vmatmul.f32.vlgmr.msra.gmra.mxu1 %v101_v21 }
 0x12e   :  { %v119_v29 = vpop.f32.mrf.mxu1 }
 0x12f   :  { %v129_v30 = vmul.f32 %v128_v28, %v119_v29 }
 0x131   :  { %201 = vrsqrt.f32 %v129_v30  ;;  %vm137_vm1 = vcmp.eq.f32.partialorder %v129_v30, inf  ;;  %v140_v38 = vand.u32 2147483648, %v129_v30  ;;  %vm139_vm2 = vcmp.eq.f32.partialorder %v129_v30, 0.0 }
 0x137   :  { %v202_v31 = vpop.eup %201 }
 0x138   :  { %v131_v32 = vmul.f32 %v202_v31, %v129_v30 }
 0x13a   :  { %v132_v33 = vmul.f32 %v202_v31, %v131_v32 }
 0x13c   :  { %v133_v34 = vmul.f32 0.5, %v132_v33 }
 0x13e   :  { %v134_v35 = vsub.f32 1.5, %v133_v34 }
 0x140   :  { %v135_v36 = vmul.f32 %v202_v31, %v134_v35 }
 0x142   :  { %v136_v37 = vmul.f32 %v135_v36, %v129_v30 }
 0x144   :  { %v138_v39 = vsel %vm137_vm1, %v129_v30, %v136_v37 }
 0x145   :  { %v141_v40 = vsel %vm139_vm2, %v140_v38, %v138_v39 }
 0x146   :  { %v142_v41 = vadd.f32 1e-06, %v141_v40 }
 0x148   :  { %203 = vrcp.f32 %v142_v41  ;;  %v154_v45 = vand.u32 2147483648, %v142_v41  ;;  %v152_v47 = vand.u32 2147483647, %v142_v41  ;;  %vm148_vm4 = vweird.f32 %v142_v41 }
 0x14a   :  { %v155_v49 = vor.u32 1.1754944e-38, %v154_v45  ;;  %vm153_vm6 = vcmp.eq.f32.partialorder %v152_v47, 8.507059e+37 }
 0x14e   :  { %v204_v42 = vpop.eup %203 }
 0x14f   :  { %v144_v43 = vmul.f32 %v204_v42, %v142_v41  ;;  %vm149_vm3 = vweird.f32 %v204_v42 }
 0x150   :  { %vm150_vm5 = vmor %vm148_vm4, %vm149_vm3 }
 0x151   :  { %v145_v44 = vsub.f32 1.0, %v144_v43 }
 0x153   :  { %v146_v46 = vmul.f32 %v204_v42, %v145_v44 }
 0x155   :  { %v147_v48 = vadd.f32 %v204_v42, %v146_v46 }
 0x157   :  { %v151_v50 = vsel %vm150_vm5, %v204_v42, %v147_v48 }
 0x158   :  { %v156_v52 = vsel %vm153_vm6, %v155_v49, %v151_v50 }
 0x159   :  { %v157_v53 = vmul.f32 %v156_v52, %v100_v20 }
 0x15b   :  { %v162_v55 = vmul.f32 %v195_v51, %v157_v53 }
 0x15d   :  { %v167_v56 = vadd.f32 %v196_v54, %v162_v55 }
 0x15f   :  { %v168_v57 = vadd.f32 %v167_v56, %v348_v12 }
 0x161   :  { %169 = vst [vmem:[#allocation8] sm:$0xf] %v168_v57 }
 0x162   :  { %180 = dma.vmem_to_hbm [thread:$0]  %s176_s6, 64, %s178_s9, [#allocation4]  }
 0x163   :  { %305 = dma.done.wait [#allocation4], 64  }
 0x164   :  { %306 = vsyncadd [#allocation4], 4294967232 }
 0x165   :  { %185 = vsyncpa [#allocation3], 1 }
 0x166   :  { %186 = vsyncpa [#allocation6], 1 }
 0x167   :  { %187 = vsyncpa [#allocation4], 1 }

</bundles_post_ra>
